<compile_context>
chip_gen: v6e
topology: v6e:2x2x1
jax: 0.10.0
libtpu: 0.0.40
codegen_flags: <defaults>
</compile_context>

<pallas_src>
import functools
import math

import jax
import jax.numpy as jnp
from jax import lax
from jax.experimental import pallas as pl
from jax.experimental.pallas import tpu as pltpu

_LANE = 128


def _round_up(x, m):
    return (x + m - 1) // m * m


def _sum_rows_lanes(v):
    # (1, C, R, 128) -> (1, C): reduce lanes first, then sublanes.
    return jnp.sum(jnp.sum(v, axis=3), axis=2)


def _dice_loss_kernel(logit_ref, ytrue_ref, out_ref,
                      inter_ref, sum_t_ref, sum_p_ref, *,
                      use_sigmoid, smooth_nom, smooth_denom,
                      s_valid, tile_rows, has_pad):
    s = pl.program_id(1)
    ns = pl.num_programs(1)

    @pl.when(s == 0)
    def _():
        inter_ref[...] = jnp.zeros_like(inter_ref)
        sum_t_ref[...] = jnp.zeros_like(sum_t_ref)
        sum_p_ref[...] = jnp.zeros_like(sum_p_ref)

    x = logit_ref[...].astype(jnp.float32)   # (1, C, TILE_ROWS, 128)
    t = ytrue_ref[...].astype(jnp.float32)   # (1, C, TILE_ROWS, 128)

    if use_sigmoid:
        y_pred = jax.nn.sigmoid(x)
    else:
        # softmax over class axis (axis=1): per-voxel, so spatial tiling is exact.
        m = jnp.max(x, axis=1, keepdims=True)
        e = jnp.exp(x - m)
        denom = jnp.sum(e, axis=1, keepdims=True)          # (1, 1, R, 128)
        y_pred = e * pl.reciprocal(denom, approx=False)    # one recip/voxel + C muls

    if has_pad:
        shape = x.shape
        row_ids = lax.broadcasted_iota(jnp.int32, shape, 2)
        lane_ids = lax.broadcasted_iota(jnp.int32, shape, 3)
        flat = (s * tile_rows + row_ids) * _LANE + lane_ids
        valid = flat < s_valid
        y_pred = jnp.where(valid, y_pred, 0.0)
        t = jnp.where(valid, t, 0.0)

    inter_ref[...] += _sum_rows_lanes(t * y_pred)           # (1, C)
    sum_t_ref[...] += _sum_rows_lanes(t)                    # (1, C)
    sum_p_ref[...] += _sum_rows_lanes(y_pred)               # (1, C)

    @pl.when(s == ns - 1)
    def _():
        dice = 1.0 - (2.0 * inter_ref[...] + smooth_nom) / (
            sum_t_ref[...] + sum_p_ref[...] + smooth_denom)          # (1, C)
        out_ref[...] = jnp.mean(dice, axis=1, keepdims=True).reshape(1, 1, 1)


def dice_loss(logit, y_true, *, sigmoid=False, smooth_nom=1.0,
              smooth_denom=1.0, frequency_weighting=False, weight=None,
              max_tile_rows=256):
    """Pallas implementation of DiceLoss.forward."""
    if logit.shape != y_true.shape:
        raise ValueError('Shape of predicted and true labels does not match.')
    B, C = logit.shape[0], logit.shape[1]
    S = math.prod(logit.shape[2:]) if len(logit.shape) > 2 else 1

    rows = max(pl.cdiv(S, _LANE), 1)
    rows = _round_up(rows, 8)
    tile_rows = min(max_tile_rows, rows)              # 256*128 lanes/tile max
    rows_pad = _round_up(rows, tile_rows)
    s_pad = rows_pad * _LANE
    ns = rows_pad // tile_rows

    def _prep(a):
        a = a.reshape(B, C, S)
        if s_pad != S:
            a = jnp.pad(a, ((0, 0), (0, 0), (0, s_pad - S)))
        return a.reshape(B, C, rows_pad, _LANE)

    logit_r = _prep(logit)      # native dtype — no wrapper-side f32 copy
    ytrue_r = _prep(y_true)     # native dtype (e.g. bf16 one-hot)

    use_sigmoid = bool(sigmoid) or (C == 1)

    kernel = functools.partial(
        _dice_loss_kernel,
        use_sigmoid=use_sigmoid,
        smooth_nom=float(smooth_nom),
        smooth_denom=float(smooth_denom),
        s_valid=S,
        tile_rows=tile_rows,
        has_pad=(s_pad != S),
    )

    per_instance = pl.pallas_call(
        kernel,
        out_shape=jax.ShapeDtypeStruct((B, 1, 1), jnp.float32),
        grid_spec=pltpu.PrefetchScalarGridSpec(
            num_scalar_prefetch=0,
            grid=(B, ns),
            in_specs=[
                pl.BlockSpec((1, C, tile_rows, _LANE), lambda b, s: (b, 0, s, 0)),
                pl.BlockSpec((1, C, tile_rows, _LANE), lambda b, s: (b, 0, s, 0)),
            ],
            out_specs=pl.BlockSpec((1, 1, 1), lambda b, s: (b, 0, 0)),
            scratch_shapes=[
                pltpu.VMEM((1, C), jnp.float32),   # intersection
                pltpu.VMEM((1, C), jnp.float32),   # sum(y_true)
                pltpu.VMEM((1, C), jnp.float32),   # sum(y_pred)
            ],
        ),
        compiler_params=pltpu.CompilerParams(
            dimension_semantics=("parallel", "arbitrary")),
    )(logit_r, ytrue_r)

    per_instance = per_instance[:, 0, 0]            # (B,)
    if frequency_weighting:
        if weight is None:
            raise ValueError('No instance weights were given as input argument.')
        weight = jnp.asarray(weight, dtype=per_instance.dtype)
        if weight.shape != per_instance.shape:
            raise ValueError('Number of instances and instance weights do not match.')
        per_instance = per_instance * weight
    return jnp.mean(per_instance)


def _dice_loss_ref(logit, y_true, smooth_nom=1.0, smooth_denom=1.0, sigmoid=False):
    """Plain-JAX reference matching the PyTorch module."""
    B, C = logit.shape[0], logit.shape[1]
    x = logit.astype(jnp.float32)
    t = y_true.astype(jnp.float32)
    if sigmoid or C == 1:
        y_pred = jax.nn.sigmoid(x)
    else:
        y_pred = jax.nn.softmax(x, axis=1)
    yt = t.reshape(B, C, -1)
    yp = y_pred.reshape(B, C, -1)
    inter = jnp.sum(yt * yp, axis=-1)
    union = jnp.sum(yt, axis=-1) + jnp.sum(yp, axis=-1)
    dice = 1.0 - (2.0 * inter + smooth_nom) / (union + smooth_denom)
    return jnp.mean(jnp.mean(dice, axis=1))


if __name__ == "__main__":
    key = jax.random.PRNGKey(0)
    k1, k2 = jax.random.split(key)

    B, C, H, W = 2, 4, 16, 16
    logit = jax.random.normal(k1, (B, C, H, W), dtype=jnp.float32)
    labels = jax.random.randint(k2, (B, H, W), 0, C)
    # One-hot targets in bf16: exact 0/1 values, half the HBM traffic of f32.
    y_true = jax.nn.one_hot(labels, C, dtype=jnp.bfloat16)       # (B, H, W, C)
    y_true = jnp.transpose(y_true, (0, 3, 1, 2))                 # (B, C, H, W)

    loss = dice_loss(logit, y_true)
    loss = jax.block_until_ready(loss)

    ref = _dice_loss_ref(logit, y_true)
    assert jnp.allclose(loss, ref, rtol=1e-5, atol=1e-5), (loss, ref)

    print("KERNEL_OK")
</pallas_src>

<mosaic_0001>
module attributes {stable_mosaic.version = 11 : i64} {
  func.func @_dice_loss_kernel(%arg0: i32, %arg1: i32, %arg2: memref<1x4x8x128xf32, #tpu.memory_space<vmem>>, %arg3: memref<1x4x8x128xbf16, #tpu.memory_space<vmem>>, %arg4: memref<1x1x1xf32, #tpu.memory_space<vmem>>, %arg5: memref<1x4xf32, #tpu.memory_space<vmem>>, %arg6: memref<1x4xf32, #tpu.memory_space<vmem>>, %arg7: memref<1x4xf32, #tpu.memory_space<vmem>>) attributes {dimension_semantics = [#tpu.dimension_semantics<parallel>, #tpu.dimension_semantics<arbitrary>], iteration_bounds = array<i64: 2, 1>, scalar_prefetch = 0 : i64, scratch_operands = 3 : i64, tpu.core_type = #tpu.core_type<tc>, window_params = [{transform_indices = @transform_0, window_bounds = array<i64: 1, 4, 8, 128>}, {transform_indices = @transform_1, window_bounds = array<i64: 1, 4, 8, 128>}, {transform_indices = @transform_2, window_bounds = array<i64: 1, 1, 1>}]} {
    %c0_i32 = arith.constant 0 : i32
    %0 = arith.cmpi eq, %arg1, %c0_i32 : i32
    %1 = arith.extui %0 : i1 to i32
    %c0_i32_0 = arith.constant 0 : i32
    %2 = arith.cmpi ne, %1, %c0_i32_0 : i32
    scf.if %2 {
      %cst_31 = arith.constant 0.000000e+00 : f32
      %49 = vector.broadcast %cst_31 : f32 to vector<1x4xf32>
      %c0_32 = arith.constant 0 : index
      %c0_33 = arith.constant 0 : index
      %50 = vector.load %arg5[%c0_32, %c0_33] : memref<1x4xf32, #tpu.memory_space<vmem>>, vector<1x4xf32>
      tpu.vector_store %arg5[%c0_32, %c0_33], %49 {strides = array<i32>} : memref<1x4xf32, #tpu.memory_space<vmem>>, vector<1x4xf32>,
      %cst_34 = arith.constant 0.000000e+00 : f32
      %51 = vector.broadcast %cst_34 : f32 to vector<1x4xf32>
      %c0_35 = arith.constant 0 : index
      %c0_36 = arith.constant 0 : index
      %52 = vector.load %arg6[%c0_35, %c0_36] : memref<1x4xf32, #tpu.memory_space<vmem>>, vector<1x4xf32>
      tpu.vector_store %arg6[%c0_35, %c0_36], %51 {strides = array<i32>} : memref<1x4xf32, #tpu.memory_space<vmem>>, vector<1x4xf32>,
      %cst_37 = arith.constant 0.000000e+00 : f32
      %53 = vector.broadcast %cst_37 : f32 to vector<1x4xf32>
      %c0_38 = arith.constant 0 : index
      %c0_39 = arith.constant 0 : index
      %54 = vector.load %arg7[%c0_38, %c0_39] : memref<1x4xf32, #tpu.memory_space<vmem>>, vector<1x4xf32>
      tpu.vector_store %arg7[%c0_38, %c0_39], %53 {strides = array<i32>} : memref<1x4xf32, #tpu.memory_space<vmem>>, vector<1x4xf32>,
    } else {
    }
    %c0 = arith.constant 0 : index
    %c0_1 = arith.constant 0 : index
    %c0_2 = arith.constant 0 : index
    %c0_3 = arith.constant 0 : index
    %3 = vector.load %arg2[%c0, %c0_1, %c0_2, %c0_3] : memref<1x4x8x128xf32, #tpu.memory_space<vmem>>, vector<1x4x8x128xf32>
    %c0_4 = arith.constant 0 : index
    %c0_5 = arith.constant 0 : index
    %c0_6 = arith.constant 0 : index
    %c0_7 = arith.constant 0 : index
    %4 = vector.load %arg3[%c0_4, %c0_5, %c0_6, %c0_7] : memref<1x4x8x128xbf16, #tpu.memory_space<vmem>>, vector<1x4x8x128xbf16>
    %5 = arith.extf %4 : vector<1x4x8x128xbf16> to vector<1x4x8x128xf32>
    %cst = arith.constant dense<0xFF800000> : vector<1x8x128xf32>
    %6 = vector.multi_reduction <maximumf>, %3, %cst [1] : vector<1x4x8x128xf32> to vector<1x8x128xf32>
    %7 = vector.shape_cast %6 : vector<1x8x128xf32> to vector<1x1x8x128xf32>
    %8 = vector.broadcast %7 : vector<1x1x8x128xf32> to vector<1x4x8x128xf32>
    %9 = arith.subf %3, %8 : vector<1x4x8x128xf32>
    %10 = math.exp %9 : vector<1x4x8x128xf32>
    %cst_8 = arith.constant dense<0.000000e+00> : vector<1x8x128xf32>
    %11 = vector.multi_reduction <add>, %10, %cst_8 [1] : vector<1x4x8x128xf32> to vector<1x8x128xf32>
    %12 = vector.shape_cast %11 : vector<1x8x128xf32> to vector<1x1x8x128xf32>
    %13 = tpu.reciprocal %12 : vector<1x1x8x128xf32> -> vector<1x1x8x128xf32>
    %14 = vector.broadcast %13 : vector<1x1x8x128xf32> to vector<1x4x8x128xf32>
    %15 = arith.mulf %10, %14 : vector<1x4x8x128xf32>
    %16 = tpu.iota {dimensions = array<i32: 2>} : vector<1x4x8x128xi32>
    %17 = tpu.iota {dimensions = array<i32: 3>} : vector<1x4x8x128xi32>
    %c8_i32 = arith.constant 8 : i32
    %18 = arith.muli %arg1, %c8_i32 : i32
    %19 = vector.broadcast %18 : i32 to vector<1x4x8x128xi32>
    %20 = arith.addi %19, %16 : vector<1x4x8x128xi32>
    %c128_i32 = arith.constant 128 : i32
    %21 = vector.broadcast %c128_i32 : i32 to vector<1x4x8x128xi32>
    %22 = arith.muli %20, %21 : vector<1x4x8x128xi32>
    %23 = arith.addi %22, %17 : vector<1x4x8x128xi32>
    %c256_i32 = arith.constant 256 : i32
    %24 = vector.broadcast %c256_i32 : i32 to vector<1x4x8x128xi32>
    %25 = arith.cmpi slt, %23, %24 : vector<1x4x8x128xi32>
    %cst_9 = arith.constant 0.000000e+00 : f32
    %26 = vector.broadcast %cst_9 : f32 to vector<1x4x8x128xf32>
    %27 = arith.select %25, %15, %26 : vector<1x4x8x128xi1>, vector<1x4x8x128xf32>
    %cst_10 = arith.constant 0.000000e+00 : f32
    %28 = vector.broadcast %cst_10 : f32 to vector<1x4x8x128xf32>
    %29 = arith.select %25, %5, %28 : vector<1x4x8x128xi1>, vector<1x4x8x128xf32>
    %c0_11 = arith.constant 0 : index
    %c0_12 = arith.constant 0 : index
    %30 = vector.load %arg5[%c0_11, %c0_12] : memref<1x4xf32, #tpu.memory_space<vmem>>, vector<1x4xf32>
    %31 = arith.mulf %29, %27 : vector<1x4x8x128xf32>
    %cst_13 = arith.constant dense<0.000000e+00> : vector<1x4x8xf32>
    %32 = vector.multi_reduction <add>, %31, %cst_13 [3] : vector<1x4x8x128xf32> to vector<1x4x8xf32>
    %cst_14 = arith.constant dense<0.000000e+00> : vector<1x4xf32>
    %33 = vector.multi_reduction <add>, %32, %cst_14 [2] : vector<1x4x8xf32> to vector<1x4xf32>
    %34 = arith.addf %30, %33 : vector<1x4xf32>
    %c0_15 = arith.constant 0 : index
    %c0_16 = arith.constant 0 : index
    %35 = vector.load %arg5[%c0_15, %c0_16] : memref<1x4xf32, #tpu.memory_space<vmem>>, vector<1x4xf32>
    tpu.vector_store %arg5[%c0_15, %c0_16], %34 {strides = array<i32>} : memref<1x4xf32, #tpu.memory_space<vmem>>, vector<1x4xf32>,
    %c0_17 = arith.constant 0 : index
    %c0_18 = arith.constant 0 : index
    %36 = vector.load %arg6[%c0_17, %c0_18] : memref<1x4xf32, #tpu.memory_space<vmem>>, vector<1x4xf32>
    %cst_19 = arith.constant dense<0.000000e+00> : vector<1x4x8xf32>
    %37 = vector.multi_reduction <add>, %29, %cst_19 [3] : vector<1x4x8x128xf32> to vector<1x4x8xf32>
    %cst_20 = arith.constant dense<0.000000e+00> : vector<1x4xf32>
    %38 = vector.multi_reduction <add>, %37, %cst_20 [2] : vector<1x4x8xf32> to vector<1x4xf32>
    %39 = arith.addf %36, %38 : vector<1x4xf32>
    %c0_21 = arith.constant 0 : index
    %c0_22 = arith.constant 0 : index
    %40 = vector.load %arg6[%c0_21, %c0_22] : memref<1x4xf32, #tpu.memory_space<vmem>>, vector<1x4xf32>
    tpu.vector_store %arg6[%c0_21, %c0_22], %39 {strides = array<i32>} : memref<1x4xf32, #tpu.memory_space<vmem>>, vector<1x4xf32>,
    %c0_23 = arith.constant 0 : index
    %c0_24 = arith.constant 0 : index
    %41 = vector.load %arg7[%c0_23, %c0_24] : memref<1x4xf32, #tpu.memory_space<vmem>>, vector<1x4xf32>
    %cst_25 = arith.constant dense<0.000000e+00> : vector<1x4x8xf32>
    %42 = vector.multi_reduction <add>, %27, %cst_25 [3] : vector<1x4x8x128xf32> to vector<1x4x8xf32>
    %cst_26 = arith.constant dense<0.000000e+00> : vector<1x4xf32>
    %43 = vector.multi_reduction <add>, %42, %cst_26 [2] : vector<1x4x8xf32> to vector<1x4xf32>
    %44 = arith.addf %41, %43 : vector<1x4xf32>
    %c0_27 = arith.constant 0 : index
    %c0_28 = arith.constant 0 : index
    %45 = vector.load %arg7[%c0_27, %c0_28] : memref<1x4xf32, #tpu.memory_space<vmem>>, vector<1x4xf32>
    tpu.vector_store %arg7[%c0_27, %c0_28], %44 {strides = array<i32>} : memref<1x4xf32, #tpu.memory_space<vmem>>, vector<1x4xf32>,
    %c0_i32_29 = arith.constant 0 : i32
    %46 = arith.cmpi eq, %arg1, %c0_i32_29 : i32
    %47 = arith.extui %46 : i1 to i32
    %c0_i32_30 = arith.constant 0 : i32
    %48 = arith.cmpi ne, %47, %c0_i32_30 : i32
    scf.if %48 {
      %c0_31 = arith.constant 0 : index
      %c0_32 = arith.constant 0 : index
      %49 = vector.load %arg5[%c0_31, %c0_32] : memref<1x4xf32, #tpu.memory_space<vmem>>, vector<1x4xf32>
      %cst_33 = arith.constant 2.000000e+00 : f32
      %50 = vector.broadcast %cst_33 : f32 to vector<1x4xf32>
      %51 = arith.mulf %50, %49 : vector<1x4xf32>
      %cst_34 = arith.constant 1.000000e+00 : f32
      %52 = vector.broadcast %cst_34 : f32 to vector<1x4xf32>
      %53 = arith.addf %51, %52 : vector<1x4xf32>
      %c0_35 = arith.constant 0 : index
      %c0_36 = arith.constant 0 : index
      %54 = vector.load %arg6[%c0_35, %c0_36] : memref<1x4xf32, #tpu.memory_space<vmem>>, vector<1x4xf32>
      %c0_37 = arith.constant 0 : index
      %c0_38 = arith.constant 0 : index
      %55 = vector.load %arg7[%c0_37, %c0_38] : memref<1x4xf32, #tpu.memory_space<vmem>>, vector<1x4xf32>
      %56 = arith.addf %54, %55 : vector<1x4xf32>
      %cst_39 = arith.constant 1.000000e+00 : f32
      %57 = vector.broadcast %cst_39 : f32 to vector<1x4xf32>
      %58 = arith.addf %56, %57 : vector<1x4xf32>
      %59 = arith.divf %53, %58 : vector<1x4xf32>
      %cst_40 = arith.constant 1.000000e+00 : f32
      %60 = vector.broadcast %cst_40 : f32 to vector<1x4xf32>
      %61 = arith.subf %60, %59 : vector<1x4xf32>
      %cst_41 = arith.constant dense<0.000000e+00> : vector<1xf32>
      %62 = vector.multi_reduction <add>, %61, %cst_41 [1] : vector<1x4xf32> to vector<1xf32>
      %63 = vector.shape_cast %62 : vector<1xf32> to vector<1x1xf32>
      %cst_42 = arith.constant 4.000000e+00 : f32
      %64 = vector.broadcast %cst_42 : f32 to vector<1x1xf32>
      %65 = arith.divf %63, %64 : vector<1x1xf32>
      %66 = vector.shape_cast %65 : vector<1x1xf32> to vector<1x1x1xf32>
      %c0_43 = arith.constant 0 : index
      %c0_44 = arith.constant 0 : index
      %c0_45 = arith.constant 0 : index
      %67 = vector.load %arg4[%c0_43, %c0_44, %c0_45] : memref<1x1x1xf32, #tpu.memory_space<vmem>>, vector<1x1x1xf32>
      tpu.vector_store %arg4[%c0_43, %c0_44, %c0_45], %66 {strides = array<i32>} : memref<1x1x1xf32, #tpu.memory_space<vmem>>, vector<1x1x1xf32>,
    } else {
    }
    return
  }
  func.func @transform_0(%arg0: i32, %arg1: i32) -> (i32, i32, i32, i32) {
    %c0_i32 = arith.constant 0 : i32
    %c0_i32_0 = arith.constant 0 : i32
    %c0_i32_1 = arith.constant 0 : i32
    return %arg0, %c0_i32, %arg1, %c0_i32_0 : i32, i32, i32, i32
  }
  func.func @transform_1(%arg0: i32, %arg1: i32) -> (i32, i32, i32, i32) {
    %c0_i32 = arith.constant 0 : i32
    %c0_i32_0 = arith.constant 0 : i32
    %c0_i32_1 = arith.constant 0 : i32
    return %arg0, %c0_i32, %arg1, %c0_i32_0 : i32, i32, i32, i32
  }
  func.func @transform_2(%arg0: i32, %arg1: i32) -> (i32, i32, i32) {
    %c0_i32 = arith.constant 0 : i32
    %c0_i32_0 = arith.constant 0 : i32
    %c0_i32_1 = arith.constant 0 : i32
    return %arg0, %c0_i32, %c0_i32_0 : i32, i32, i32
  }
}

</mosaic_0001>

<bundles_post_ra>
// kernel: tpu_custom_call.1
= control target key start
LH: loop header
LB: loop body
LE: loop exit
PB: predicated region body
PF: predicated region fallthrough
CT: control target
= control target key end

     0   :  { %7 = vsyncpa [#allocation6], 0  ;;  %s1129_s0 = inlined_call_operand.hbm [shape: f32[2,4,8,128], index: 0, kind: input, shape index: {}]   ;;  %s1130_s1 = inlined_call_operand.hbm [shape: bf16[2,4,8,128], index: 1, kind: input, shape index: {}]   ;;  %s1131_s2 = inlined_call_operand.vmem [shape: f32[2,1,1], index: 2, kind: output, shape index: {}]  }
   0x1   :  { %9 = vsyncpa [#allocation6 + $0x1], 0 }
   0x2   :  { %10 = vsyncpa [#allocation8], 0 }
   0x3   :  { %12 = vsyncpa [#allocation8 + $0x1], 0  ;;  %s948_s9 = smov 0   ;;  %s950_s10 = smov 0  }
   0x4   :  { %s952_s11 = smov 0   ;;  %s954_s12 = smov 0  }
   0x5   :  { %s956_s13 = smov 0   ;;  %s958_s14 = smov 0  }
   0x6 LB: > { %s705_s15 = sadd.s32 4294967295, %s922_s14   ;;  %s30_s16 = sadd.s32 1, %s918_s13  ;;  %s922_s14 = sphi %s958_s14, %s18_s14   ;;  %s918_s13 = sphi %s956_s13, %s1140_s13   ;;  %s914_s12 = sphi %s954_s12, %s1139_s12   ;;  %s910_s11 = sphi %s952_s11, %s1138_s11   ;;  %s906_s10 = sphi %s950_s10, %s1137_s10   ;;  %s902_s9 = sphi %s948_s9, %s1136_s9  }
   0x7   : > { %p32_p0 = scmp.ge.s32.totalorder %s30_s16, 2  ;;  %s39_s17 = sadd.s32 1, %s910_s11 }
   0x8   : > { %p46_p1 = scmp.ne.s32.totalorder %s910_s11, %s906_s10  ;;  %p47_p2 = scmp.eq.s32.totalorder %s922_s14, 0 }
   0x9   : > { %s1142_s16 = smov (%p32_p0, %s30_s16), 0  ;;  %p52_p4 = scmp.ne.s32.totalorder %s906_s10, %s902_s9 }
   0xa   : > { %p984_p3 = por %p47_p2, %p46_p1  ;;  %s34_s19 = ssub.s32 %s918_s13, %s1142_s16 }
   0xb   : > { %p53_p5 = scmp.eq.s32.totalorder %s705_s15, 0  ;;  %p37_p6 = scmp.eq.s32.totalorder %s34_s19, 0 }
   0xc   : > { %p742_p8 = scmp.lt.s32.totalorder %s922_s14, 2  ;;  %s1000_s22 = sand.u32 1, %s910_s11  }
   0xd   : > { %p991_p7 = por %p53_p5, %p52_p4  ;;  %s720_s23 = sshll.u32 %s918_s13, 9 }
   0xe   : > { %s997_s21 = scalar_select %p37_p6, %s910_s11, %s39_s17  }
   0xf   : > { %s709_s24 = sshll.u32 %s1000_s22, 5  ;;  %s141_s27 = scalar_lea.hbm %s1129_s0, %s720_s23 }
  0x10   : > { %s134_s28 = scalar_lea.vmem [#allocation5], %s709_s24  ;;  %p1009_p9 = pnand %p742_p8, %p984_p3 }
  0x11   : > { %s142_s29 = sshll.u32 %s134_s28, 4  ;;  %s131_s3 = scalar_lea.sflag [#allocation6], %s1000_s22  ;;  %s143_s29 = int_to_ptr.vmem [resolvable:$true] %s142_s29 }
  0x12   : > { %p814_p10 = pneg %p1009_p9  ;;  %s825_s4 = scalar_lea.vmem %s143_s29, 512 }
  0x13   : > { %p826_p11 = scmp.ne.s32.totalorder %s143_s29, %s825_s4  ;;  %s924_s5 = smov [#allocation5]  }
  0x14   : > { %s830_s6 = sshll.u32 %s924_s5, 4  ;;  %s831_s6 = int_to_ptr.vmem [resolvable:$false] %s830_s6 }
  0x15   : > { %p828_p12 = pnand %p826_p11, %p814_p10  ;;  %s832_s7 = scalar_lea.vmem %s831_s6, 1024 }
  0x16   : > { %p833_p0 = scmp.lt.s32.totalorder %s143_s29, %s831_s6  ;;  %p834_p1 = scmp.lt.s32.totalorder %s832_s7, %s825_s4 }
  0x17   : > { %p829_p13 = pneg %p828_p12 }
  0x18   : > { %p835_p2 = por %p834_p1, %p833_p0 }
  0x1a   : > { %p836_p3 = pnand %p835_p2, %p829_p13 }
  0x1c   : > { %839 = shalt.err (!%p836_p3)
}
  0x1d   : > { %s925_s8 = smov 128   ;;  %s926_s9 = smov 8  }
  0x1e   : > { %738 = dma.hbm_to_vmem [thread:$0]  (!%p1009_p9), %s141_s27, 512, %s143_s29, %s131_s3, %s925_s8, %s925_s8, %s926_s9  }
  0x1f   : > { %p715_p4 = scmp.ge.s32.totalorder %s922_s14, 1  ;;  %p172_p5 = scmp.lt.s32.totalorder %s922_s14, 3 }
  0x20   : > { %s712_s15 = sshll.u32 %s1000_s22, 4  ;;  %s721_s18 = sshll.u32 %s918_s13, 8 }
  0x21   : > { %p1024_p6 = pnand %p715_p4, %p172_p5  ;;  %s156_s19 = scalar_lea.vmem [#allocation7], %s712_s15 }
  0x22   : > { %s164_s23 = sshll.u32 %s156_s19, 4  ;;  %s163_s26 = scalar_lea.hbm %s1130_s1, %s721_s18  ;;  %s165_s23 = int_to_ptr.vmem [resolvable:$true] %s164_s23 }
  0x23   : > { %s153_s28 = scalar_lea.sflag [#allocation8], %s1000_s22  ;;  %s853_s4 = scalar_lea.vmem %s165_s23, 256 }
  0x24   : > { %p854_p8 = scmp.ne.s32.totalorder %s165_s23, %s853_s4  ;;  %s927_s27 = smov [#allocation7]  }
  0x25   : > { %s858_s29 = sshll.u32 %s927_s27, 4  ;;  %s859_s29 = int_to_ptr.vmem [resolvable:$false] %s858_s29 }
  0x26   : > { %p856_p11 = pnand %p854_p8, %p814_p10  ;;  %s860_s3 = scalar_lea.vmem %s859_s29, 512 }
  0x27   : > { %p861_p13 = scmp.lt.s32.totalorder %s165_s23, %s859_s29  ;;  %p862_p0 = scmp.lt.s32.totalorder %s860_s3, %s853_s4 }
  0x28   : > { %p857_p12 = pneg %p856_p11 }
  0x29   : > { %p863_p1 = por %p862_p0, %p861_p13 }
  0x2b   : > { %p864_p2 = pnand %p863_p1, %p857_p12 }
  0x2d   : > { %867 = shalt.err (!%p864_p2)
}
  0x2e   : > { %s928_s5 = smov 64   ;;  %s929_s6 = smov 4  }
  0x2f   : > { %741 = dma.hbm_to_vmem [thread:$0]  (!%p1009_p9), %s163_s26, 256, %s165_s23, %s153_s28, %s928_s5, %s928_s5, %s929_s6  }
  0x30   : > { %176 = sbr.rel (%p1024_p6) target bundleno = 712 (0x2c8), region = 28  ;;  %s178_s22 = sand.u32 (!%p1024_p6), 1, %s906_s10  }
  0x31   : > { %s716_s7 = sshll.u32 (!%p1024_p6), %s178_s22, 5  ;;  %s179_s8 = scalar_lea.sflag (!%p1024_p6), [#allocation6], %s178_s22 }
  0x32   : > { %s182_s9 = scalar_lea.vmem (!%p1024_p6), [#allocation5], %s716_s7 }
  0x35   : > { %893 = dma.done.wait (%p991_p7), %s179_s8, 512  }
  0x36   : > { %895 = vsyncadd (%p991_p7), %s179_s8, 4294966784  ;;  %s717_s15 = sshll.u32 %s178_s22, 4  ;;  %s188_s18 = scalar_lea.sflag [#allocation8], %s178_s22 }
  0x37   : > { %s191_s19 = scalar_lea.vmem [#allocation7], %s717_s15 }
  0x38   : > { %897 = dma.done.wait (%p991_p7), %s188_s18, 256  }
  0x39   : > { %899 = vsyncadd (%p991_p7), %s188_s18, 4294967040  ;;  %v261_v0 = vlaneseq  ;;  %v723_v5 = vld [vmem:[%s191_s19] sm:$0xff]   ;;  %v227_v9 = vld [vmem:[%s182_s9 + $0x8] sm:$0xff]  ;;  %vm312_vm1 = vcmask 1041409   ;;  %vm314_vm2 = vcmask 1042434   ;;  %vm316_vm3 = vcmask 1043459  }
  0x3a   : > { %v226_v6 = vld [vmem:[%s182_s9] sm:$0xff]  ;;  %v724_v7 = vunpack.c.l.bf16 %v723_v5  ;;  %v725_v8 = vunpack.c.h.bf16 %v723_v5  ;;  %v228_v10 = vld [vmem:[%s182_s9 + $0x10] sm:$0xff]  ;;  %v229_v11 = vld [vmem:[%s182_s9 + $0x18] sm:$0xff]  ;;  %vm319_vm4 = vcmask 60416   ;;  %v930_v63 = vmov 0   ;;  %p215_p7 = scmp.lt.s32.totalorder %s914_s12, 1 }
  0x3b   : > { %v1049_v1 = vshrl.u32 %v261_v0, 7  ;;  %v1051_v2 = vand.u32 127, %v261_v0  ;;  %v730_v12 = vld [vmem:[%s191_s19 + $0x8] sm:$0xff]   ;;  %v238_v13 = vmax.f32 %v226_v6, %v227_v9  ;;  %v239_v14 = vmax.f32 %v228_v10, %v229_v11  ;;  %798 = vset.pattern.permute.xlu1 %v930_v63  ;;  %799 = vset.pattern.permute.xlu0 %v930_v63 }
  0x3c   : > { %v728_v18 = vunpack.c.l.bf16 %v730_v12  ;;  %v729_v28 = vunpack.c.h.bf16 %v730_v12  ;;  %vm222_vm5 = vcmask 24576   ;;  %s1144_s12 = smov (!%p215_p7, %s914_s12), 1  ;;  %vm609_vm6 = vcmask 0  }
  0x3d   : > { %v268_v3 = vmul.u32 128, %v1049_v1  ;;  %v240_v16 = vmax.f32 %v238_v13, %v239_v14  ;;  %v1065_v51 = vsub.s32 %v1051_v2, %v1049_v1  ;;  %s217_s17 = scalar_lea.vmem %s1131_s2, %s1144_s12 }
  0x3f   : > { %v269_v4 = vadd.s32 %v268_v3, %v1051_v2  ;;  %v241_v19 = vsub.f32 %v226_v6, %v240_v16  ;;  %v242_v20 = vsub.f32 %v227_v9, %v240_v16  ;;  %v243_v21 = vsub.f32 %v228_v10, %v240_v16 }
  0x40   : > { %v244_v22 = vsub.f32 %v229_v11, %v240_v16 }
  0x41   : > { %vm270_vm0 = vcmp.lt.s32.totalorder %v269_v4, 256  ;;  %v245_v23 = vmul.f32 1.442695, %v241_v19  ;;  %v247_v24 = vmul.f32 1.442695, %v242_v20 }
  0x42   : > { %v275_v15 = vsel %vm270_vm0, %v724_v7, 0.0  ;;  %v276_v17 = vsel %vm270_vm0, %v725_v8, 0.0  ;;  %v249_v25 = vmul.f32 1.442695, %v243_v21  ;;  %v277_v26 = vsel %vm270_vm0, %v728_v18, 0.0 }
  0x43   : > { %390 = vadd.xlane.f32.xlu0 %v275_v15  ;;  %v251_v27 = vmul.f32 1.442695, %v244_v22  ;;  %800 = vpow2.f32 %v245_v23  ;;  %v278_v29 = vsel %vm270_vm0, %v729_v28, 0.0 }
  0x44   : > { %802 = vpow2.f32 %v247_v24 }
  0x45   : > { %804 = vpow2.f32 %v249_v25  ;;  %v931_v25 = vmov 0.0  }
  0x46   : > { %806 = vpow2.f32 %v251_v27  ;;  %224 = vst.msk [vmem:[#allocation3] sm:$0x1] %vm222_vm5, %v931_v25  ;;  %223 = vst.msk [vmem:[#allocation2] sm:$0x1] %vm222_vm5, %v931_v25 }
  0x47   : > { %392 = vadd.xlane.f32.xlu0 %v276_v17  ;;  %225 = vst.msk [vmem:[#allocation4] sm:$0x1] %vm222_vm5, %v931_v25 }
  0x4b   : > { %394 = vadd.xlane.f32.xlu0 %v277_v26 }
  0x4f   : > { %396 = vadd.xlane.f32.xlu0 %v278_v29 }
  0x50   : > { %v801_v30 = vpop.eup %800 }
  0x51   : > { %v803_v31 = vpop.eup %802 }
  0x52   : > { %v805_v32 = vpop.eup %804  ;;  %v253_v33 = vadd.f32 %v803_v31, %v801_v30 }
  0x53   : > { %v807_v34 = vpop.eup %806 }
  0x54   : > { %v254_v35 = vadd.f32 %v805_v32, %v253_v33 }
  0x56   : > { %v255_v36 = vadd.f32 %v807_v34, %v254_v35 }
  0x58   : > { %808 = vrcp.f32 %v255_v36 }
  0x65   : > { %v809_v37 = vpop.eup %808 }
  0x66   : > { %v257_v38 = vmul.f32 %v809_v37, %v801_v30  ;;  %v258_v39 = vmul.f32 %v809_v37, %v803_v31  ;;  %v259_v40 = vmul.f32 %v809_v37, %v805_v32  ;;  %v260_v46 = vmul.f32 %v809_v37, %v807_v34 }
  0x67   : > { %v330_v30 = vsub.s32 1, %v1049_v1  ;;  %v334_v31 = vsub.s32 2, %v1049_v1  ;;  %v338_v32 = vsub.s32 3, %v1049_v1 }
  0x68   : > { %v271_v41 = vsel %vm270_vm0, %v257_v38, 0.0  ;;  %v272_v43 = vsel %vm270_vm0, %v258_v39, 0.0  ;;  %v273_v44 = vsel %vm270_vm0, %v259_v40, 0.0  ;;  %v274_v47 = vsel %vm270_vm0, %v260_v46, 0.0 }
  0x69   : > { %491 = vadd.xlane.f32.xlu1 %v271_v41  ;;  %v280_v42 = vmul.f32 %v275_v15, %v271_v41  ;;  %v282_v45 = vmul.f32 %v277_v26, %v273_v44  ;;  %v281_v48 = vmul.f32 %v276_v17, %v272_v43  ;;  %v283_v49 = vmul.f32 %v278_v29, %v274_v47 }
  0x6a   : > { %v932_v26 = vmov 1966171168   ;;  %v326_v29 = vsub.s32 0, %v1049_v1 }
  0x6b   : > { %284 = vadd.xlane.f32.xlu0 %v280_v42  ;;  %v343_v27 = vunpack.c.l.s4 %v932_v26 }
  0x6d   : > { %493 = vadd.xlane.f32.xlu1 %v272_v43  ;;  %v344_v28 = vunpack.c.0.s8 %v343_v27 }
  0x6f   : > { %288 = vadd.xlane.f32.xlu0 %v282_v45  ;;  %v347_v33 = vsub.s32 %v344_v28, %v1049_v1 }
  0x71   : > { %495 = vadd.xlane.f32.xlu1 %v273_v44 }
  0x75   : > { %497 = vadd.xlane.f32.xlu1 %v274_v47 }
  0x79   : > { %286 = vadd.xlane.f32.xlu1 %v281_v48 }
  0x7d   : > { %290 = vadd.xlane.f32.xlu1 %v283_v49 }
  0xcc   : > { %v391_v50 = vpop.xlane.xlu0 %390 }
  0xcd   : > { %v405_v53 = vrot.slane %v391_v50, %v1065_v51 }
  0xd0   : > { %v393_v52 = vpop.xlane.xlu0 %392 }
  0xd1   : > { %v409_v54 = vrot.slane %v393_v52, %v1065_v51 }
  0xd3   : > { %v418_v56 = vsel %vm312_vm1, %v409_v54, %v405_v53 }
  0xd4   : > { %v395_v55 = vpop.xlane.xlu0 %394 }
  0xd5   : > { %v413_v57 = vrot.slane %v395_v55, %v1065_v51 }
  0xd7   : > { %v419_v59 = vsel %vm314_vm2, %v413_v57, %v418_v56 }
  0xd8   : > { %v397_v58 = vpop.xlane.xlu0 %396 }
  0xd9   : > { %v417_v60 = vrot.slane %v397_v58, %v1065_v51 }
  0xdb   : > { %v420_v61 = vsel %vm316_vm3, %v417_v60, %v419_v59 }
  0xdc   : > { %v422_v62 = vsel %vm319_vm4, %v420_v61, 0.0 }
  0xdd   : > { %423 = vadd.xlane.f32.xlu0 %v422_v62 }
  0xf2   : > { %v492_v0 = vpop.xlane.xlu1 %491 }
  0xf3   : > { %v506_v7 = vrot.slane %v492_v0, %v1065_v51 }
  0xf4   : > { %v285_v3 = vpop.xlane.xlu0 %284 }
  0xf5   : > { %v299_v13 = vrot.slane %v285_v3, %v1065_v51 }
  0xf6   : > { %v494_v2 = vpop.xlane.xlu1 %493 }
  0xf7   : > { %v510_v5 = vrot.slane %v494_v2, %v1065_v51 }
  0xf8   : > { %v289_v11 = vpop.xlane.xlu0 %288 }
  0xf9   : > { %v519_v9 = vsel %vm312_vm1, %v510_v5, %v506_v7  ;;  %v307_v17 = vrot.slane %v289_v11, %v1065_v51  ;;  %v389_v7 = vld [vmem:[#allocation3] sm:$0x1] }
  0xfa   : > { %v496_v4 = vpop.xlane.xlu1 %495 }
  0xfb   : > { %v514_v6 = vrot.slane %v496_v4, %v1065_v51 }
  0xfd   : > { %v520_v12 = vsel %vm314_vm2, %v514_v6, %v519_v9 }
  0xfe   : > { %v498_v8 = vpop.xlane.xlu1 %497 }
  0xff   : > { %v518_v10 = vrot.slane %v498_v8, %v1065_v51 }
 0x101   : > { %v521_v14 = vsel %vm316_vm3, %v518_v10, %v520_v12 }
 0x102   : > { %v287_v15 = vpop.xlane.xlu1 %286  ;;  %v523_v16 = vsel %vm319_vm4, %v521_v14, 0.0 }
 0x103   : > { %v303_v18 = vrot.slane %v287_v15, %v1065_v51  ;;  %524 = vadd.xlane.f32.xlu1 %v523_v16 }
 0x105   : > { %v313_v19 = vsel %vm312_vm1, %v303_v18, %v299_v13  ;;  %v490_v13 = vld [vmem:[#allocation4] sm:$0x1] }
 0x106   : > { %v291_v20 = vpop.xlane.xlu1 %290  ;;  %v315_v21 = vsel %vm314_vm2, %v307_v17, %v313_v19  ;;  %v279_v19 = vld [vmem:[#allocation2] sm:$0x1] }
 0x107   : > { %v311_v22 = vrot.slane %v291_v20, %v1065_v51 }
 0x109   : > { %v317_v23 = vsel %vm316_vm3, %v311_v22, %v315_v21 }
 0x10a   : > { %v320_v24 = vsel %vm319_vm4, %v317_v23, 0.0 }
 0x10b   : > { %321 = vadd.xlane.f32.xlu0 %v320_v24 }
 0x166   : > { %v424_v34 = vpop.xlane.xlu0 %423 }
 0x167   : > { %v429_v35 = vrot.slane %v424_v34, %v326_v29  ;;  %v433_v36 = vrot.slane %v424_v34, %v330_v30  ;;  %v437_v37 = vrot.slane %v424_v34, %v334_v31  ;;  %v441_v38 = vrot.slane %v424_v34, %v338_v32 }
 0x169   : > { %v442_v39 = vcombine.low %v429_v35, %v433_v36  ;;  %v443_v40 = vcombine.low %v437_v37, %v441_v38 }
 0x16b   : > { %v450_v41 = vrot.slane %v442_v39, %v347_v33  ;;  %v457_v42 = vrot.slane %v443_v40, %v347_v33 }
 0x16d   : > { %v458_v43 = vcombine.low %v450_v41, %v457_v42 }
 0x16f   : > { %v465_v44 = vrot.slane %v458_v43, %v347_v33 }
 0x171   : > { %467 = vperm.xlu1 %798, %v465_v44  }
 0x18c   : > { %v525_v45 = vpop.xlane.xlu1 %524 }
 0x18d   : > { %v530_v46 = vrot.slane %v525_v45, %v326_v29  ;;  %v534_v47 = vrot.slane %v525_v45, %v330_v30  ;;  %v538_v48 = vrot.slane %v525_v45, %v334_v31  ;;  %v542_v49 = vrot.slane %v525_v45, %v338_v32 }
 0x18f   : > { %v543_v50 = vcombine.low %v530_v46, %v534_v47  ;;  %v544_v52 = vcombine.low %v538_v48, %v542_v49 }
 0x191   : > { %v551_v1 = vrot.slane %v543_v50, %v347_v33  ;;  %v558_v53 = vrot.slane %v544_v52, %v347_v33 }
 0x193   : > { %v559_v54 = vcombine.low %v551_v1, %v558_v53 }
 0x194   : > { %v322_v55 = vpop.xlane.xlu0 %321 }
 0x195   : > { %v327_v56 = vrot.slane %v322_v55, %v326_v29  ;;  %v331_v57 = vrot.slane %v322_v55, %v330_v30  ;;  %v335_v58 = vrot.slane %v322_v55, %v334_v31  ;;  %v339_v59 = vrot.slane %v322_v55, %v338_v32 }
 0x196   : > { %v566_v60 = vrot.slane %v559_v54, %v347_v33 }
 0x197   : > { %v340_v61 = vcombine.low %v327_v56, %v331_v57  ;;  %v341_v62 = vcombine.low %v335_v58, %v339_v59 }
 0x198   : > { %568 = vperm.xlu0 %799, %v566_v60  }
 0x199   : > { %v348_v63 = vrot.slane %v340_v61, %v347_v33  ;;  %v355_v0 = vrot.slane %v341_v62, %v347_v33 }
 0x19b   : > { %v356_v2 = vcombine.low %v348_v63, %v355_v0 }
 0x19d   : > { %v363_v3 = vrot.slane %v356_v2, %v347_v33 }
 0x19f   : > { %365 = vperm.xlu1 %798, %v363_v3  }
 0x1ec   : > { %v468_v4 = vpop.permute.xlu1 %467 }
 0x1ed   : > { %v472_v5 = vrot.slane %v468_v4, %v1065_v51 }
 0x1ef   : > { %v479_v6 = vrot.slane %v472_v5, %v347_v33 }
 0x1f1   : > { %v486_v8 = vrot.slane %v479_v6, %v347_v33 }
 0x1f3   : > { %v488_v9 = vadd.f32 %v486_v8, %v389_v7 }
 0x1f5   : > { %489 = vst.msk [vmem:[#allocation3] sm:$0x1] %vm222_vm5, %v488_v9 }
 0x1fc   : > { %v597_v22 = vld [vmem:[#allocation3] sm:$0x1] }
 0x213   : > { %v569_v10 = vpop.permute.xlu0 %568 }
 0x214   : > { %v573_v11 = vrot.slane %v569_v10, %v1065_v51 }
 0x216   : > { %v580_v12 = vrot.slane %v573_v11, %v347_v33 }
 0x218   : > { %v587_v14 = vrot.slane %v580_v12, %v347_v33 }
 0x21a   : > { %v589_v15 = vadd.f32 %v587_v14, %v490_v13  ;;  %v366_v16 = vpop.permute.xlu1 %365 }
 0x21b   : > { %v370_v17 = vrot.slane %v366_v16, %v1065_v51 }
 0x21c   : > { %590 = vst.msk [vmem:[#allocation4] sm:$0x1] %vm222_vm5, %v589_v15 }
 0x21d   : > { %v377_v18 = vrot.slane %v370_v17, %v347_v33 }
 0x21f   : > { %v384_v20 = vrot.slane %v377_v18, %v347_v33 }
 0x221   : > { %v386_v21 = vadd.f32 %v384_v20, %v279_v19 }
 0x223   : > { %388 = vst.msk [vmem:[#allocation2] sm:$0x1] %vm222_vm5, %v386_v21  ;;  %v598_v23 = vld [vmem:[#allocation4] sm:$0x1] }
 0x224   : > { %v599_v24 = vadd.f32 %v598_v23, %v597_v22 }
 0x226   : > { %v600_v25 = vadd.f32 1.0, %v599_v24 }
 0x228   : > { %810 = vrcp.f32 %v600_v25 }
 0x22a   : > { %v594_v26 = vld [vmem:[#allocation2] sm:$0x1] }
 0x22b   : > { %v595_v27 = vmul.f32 2.0, %v594_v26 }
 0x22d   : > { %v596_v28 = vadd.f32 1.0, %v595_v27 }
 0x235   : > { %v811_v29 = vpop.eup %810 }
 0x236   : > { %v602_v51 = vmul.f32 %v811_v29, %v596_v28 }
 0x238   : > { %v603_v30 = vsub.f32 1.0, %v602_v51 }
 0x23a   : > { %v604_v31 = vsel %vm222_vm5, %v603_v30, 0.0 }
 0x23b   : > { %605 = vadd.xlane.f32.xlu1 %v604_v31 }
 0x2c4   : > { %v606_v32 = vpop.xlane.xlu1 %605 }
 0x2c5   : > { %v608_v33 = vmul.f32 0.25, %v606_v32 }
 0x2c7   : > { %610 = vst.msk [vmem:[%s217_s17] sm:$0x1] %vm609_vm6, %v608_v33 }
 0x2c8 PF: > { %s18_s14 = sadd.s32 1, %s922_s14   ;;  %s1136_s9 = smov %s906_s10 }
 0x2c9   : > { %p15_p9 = scmp.ge.s32.totalorder %s18_s14, 4   ;;  %s1137_s10 = smov %s910_s11 }
 0x2ca   : > { %s1138_s11 = smov %s997_s21  ;;  %s1139_s12 = smov %s918_s13 }
 0x2cb   : > { %s1140_s13 = smov %s1142_s16  ;;  %17 = sbr.rel (!%p15_p9) target bundleno = 6 (0x6), region = 89 }
 0x2d0   :  { %628 = vsyncpa [#allocation6], 1 }
 0x2d1   :  { %630 = vsyncpa [#allocation6 + $0x1], 1 }
 0x2d2   :  { %631 = vsyncpa [#allocation8], 1 }
 0x2d3   :  { %633 = vsyncpa [#allocation8 + $0x1], 1 }

</bundles_post_ra>
